<compile_context>
chip_gen: v7x
topology: tpu7x:2x2x1
jax: 0.10.0
libtpu: 0.0.40
codegen_flags: <defaults>
</compile_context>

<pallas_src>
import jax
import jax.numpy as jnp
from jax import lax
from jax.experimental import pallas as pl
from jax.experimental.pallas import tpu as pltpu


def _inter_region_kernel(tar_ref, fs_ref, ft_ref, ps_s_ref, ps_t_ref,
                         num_s_acc, num_t_acc, cnt_acc):
    # tar_ref   : (1, 1, T)  int32 class labels for this HW tile
    # fs/ft_ref : (1, C, T)  features (native dtype, bf16 or f32)
    # ps_*_ref  : (1, K, K)  f32 pairwise cosine similarity (written on last tile)
    # num_*_acc : (C, K)     f32 accumulated masked spatial sums (scratch)
    # cnt_acc   : (K, 1)     f32 accumulated per-class pixel counts (scratch)
    hw = pl.program_id(1)
    K = ps_s_ref.shape[1]
    T = tar_ref.shape[2]

    @pl.when(hw == 0)
    def _init():
        num_s_acc[...] = jnp.zeros_like(num_s_acc)
        num_t_acc[...] = jnp.zeros_like(num_t_acc)
        cnt_acc[...] = jnp.zeros_like(cnt_acc)

    tar = tar_ref[0]                                              # (1, T) int32
    class_ids = lax.broadcasted_iota(jnp.int32, (K, T), 0)        # (K, T)
    mask = tar == class_ids                                       # (K, T) bool

    # Per-class pixel counts via XLU lane reduction (keeps the MXU free).
    cnt_acc[...] += jnp.sum(mask.astype(jnp.float32), axis=1, keepdims=True)

    # Masked spatial sums per class via MXU: (C,T) x (K,T)^T -> (C,K), f32 acc.
    onehot = mask.astype(fs_ref.dtype)                            # (K, T)
    dims = (((1,), (1,)), ((), ()))
    num_s_acc[...] += lax.dot_general(fs_ref[0], onehot, dims,
                                      preferred_element_type=jnp.float32)
    num_t_acc[...] += lax.dot_general(ft_ref[0], onehot, dims,
                                      preferred_element_type=jnp.float32)

    @pl.when(hw == pl.num_programs(1) - 1)
    def _finalize():
        # Counts only enter through inv_i*inv_j scaling of the raw gram:
        #   center = num * inv (column scale)  =>  gram_center = (num^T num) o (inv x inv)
        inv_cnt = 1.0 / (cnt_acc[...] + 1e-6)                     # (K, 1)
        outer_dims = (((1,), (1,)), ((), ()))                     # contract size-1 dim
        inv_outer = lax.dot_general(inv_cnt, inv_cnt, outer_dims,
                                    preferred_element_type=jnp.float32)   # (K,K)
        eye = (lax.broadcasted_iota(jnp.int32, (K, K), 0) ==
               lax.broadcasted_iota(jnp.int32, (K, K), 1)).astype(jnp.float32)

        def pairwise_cos(num):  # num: (C, K) f32 masked sums
            g = lax.dot_general(num, num, (((0,), (0,)), ((), ())),
                                preferred_element_type=jnp.float32)       # (K,K)
            gc = g * inv_outer                                            # center gram
            normsq = jnp.sum(gc * eye, axis=1, keepdims=True)             # (K,1) diag
            norm = jnp.sqrt(jnp.maximum(normsq, 0.0))                     # (K,1)
            den = lax.dot_general(norm, norm, outer_dims,
                                  preferred_element_type=jnp.float32)     # (K,K)
            den = jnp.maximum(den, 1e-8)  # torch CosineSimilarity eps
            return gc / den

        ps_s_ref[0] = pairwise_cos(num_s_acc[...])
        ps_t_ref[0] = pairwise_cos(num_t_acc[...])


def _nearest_upsample_labels(target, H, W):
    # PyTorch nn.Upsample(mode='nearest'): src = floor(dst * in/out). Stays int.
    B = target.shape[0]
    th, tw = target.shape[-2:]
    rows = (jnp.arange(H) * th) // H
    cols = (jnp.arange(W) * tw) // W
    tar = target[:, 0][:, rows][:, :, cols]                       # (B, H, W)
    return tar.reshape(B, 1, H * W).astype(jnp.int32)


def _choose_hw_tile(HW, C, itemsize, budget_bytes=24 * 1024 * 1024):
    """Largest multiple-of-128 divisor of HW whose pipelined feature working set
    (2 inputs x 2 buffers x C x T x itemsize) fits a v7x-safe VMEM budget."""
    max_t = max(budget_bytes // (4 * C * itemsize), 128)
    if HW <= max_t or HW % 128 != 0:
        # TODO(synk): pad HW to a multiple of 128 to enable tiling of odd sizes.
        return HW
    t = min((max_t // 128) * 128, HW)
    while t >= 128:
        if HW % t == 0:
            return t
        t -= 128
    return HW


def inter_region_loss(preds_S, preds_T, target, num_classes, loss_weight=1.0,
                      hw_tile=None):
    if preds_S.shape[-2:] != preds_T.shape[-2:]:
        # TODO(synk): jax.image.resize 'bilinear' matches align_corners=False
        # semantics; exact bit-parity with F.interpolate is not guaranteed.
        preds_S = jax.image.resize(preds_S, preds_T.shape, method="bilinear")

    feat_dtype = jnp.result_type(preds_S.dtype, preds_T.dtype)   # bf16 stays bf16
    B, C, H, W = preds_S.shape
    HW = H * W
    K = num_classes

    tar = _nearest_upsample_labels(target, H, W)                 # (B, 1, HW) int32
    f_s = preds_S.astype(feat_dtype).reshape(B, C, HW)
    f_t = lax.stop_gradient(preds_T).astype(feat_dtype).reshape(B, C, HW)

    itemsize = jnp.dtype(feat_dtype).itemsize
    if hw_tile is None:
        t_hw = _choose_hw_tile(HW, C, itemsize)
    else:
        assert HW % hw_tile == 0 and (hw_tile % 128 == 0 or hw_tile == HW)
        t_hw = hw_tile
    n_hw = HW // t_hw

    # Working set: features (2 inputs x 2 buffers) + labels + scratch + outputs.
    working = (4 * C * t_hw * itemsize + 2 * t_hw * 4
               + (2 * C * K + K) * 4 + 4 * K * K * 4)
    vmem_limit = int(min(max(working * 5 // 4 + (4 << 20), 32 << 20), 100 << 20))

    ps_s, ps_t = pl.pallas_call(
        _inter_region_kernel,
        out_shape=(jax.ShapeDtypeStruct((B, K, K), jnp.float32),
                   jax.ShapeDtypeStruct((B, K, K), jnp.float32)),
        grid_spec=pltpu.PrefetchScalarGridSpec(
            num_scalar_prefetch=0,
            grid=(B, n_hw),
            in_specs=[
                pl.BlockSpec((1, 1, t_hw), lambda b, h: (b, 0, h)),
                pl.BlockSpec((1, C, t_hw), lambda b, h: (b, 0, h)),
                pl.BlockSpec((1, C, t_hw), lambda b, h: (b, 0, h)),
            ],
            out_specs=[
                pl.BlockSpec((1, K, K), lambda b, h: (b, 0, 0)),
                pl.BlockSpec((1, K, K), lambda b, h: (b, 0, 0)),
            ],
            scratch_shapes=[
                pltpu.VMEM((C, K), jnp.float32),
                pltpu.VMEM((C, K), jnp.float32),
                pltpu.VMEM((K, 1), jnp.float32),
            ],
        ),
        compiler_params=pltpu.CompilerParams(
            dimension_semantics=("parallel", "arbitrary"),
            vmem_limit_bytes=vmem_limit),
    )(tar, f_s, f_t)

    # Final MSE over the tiny (B, K, K) similarity matrices (glue).
    return loss_weight * jnp.mean((ps_s - ps_t) ** 2)


def _reference_loss(preds_S, preds_T, target, num_classes, loss_weight=1.0):
    # Pure-JAX reference mirroring the PyTorch module (for sanity check).
    if preds_S.shape[-2:] != preds_T.shape[-2:]:
        preds_S = jax.image.resize(preds_S, preds_T.shape, method="bilinear")
    B, C, H, W = preds_S.shape
    K = num_classes
    tar = _nearest_upsample_labels(target, H, W).reshape(B, H * W)  # (B, HW) int32
    f_s = preds_S.astype(jnp.float32).reshape(B, C, H * W)
    f_t = preds_T.astype(jnp.float32).reshape(B, C, H * W)
    onehot = (tar[:, None, :] ==
              jnp.arange(K, dtype=jnp.int32)[None, :, None]).astype(jnp.float32)

    def centers(f):
        num = jnp.einsum('bcn,bkn->bck', f, onehot)
        cnt = jnp.sum(onehot, axis=-1)[:, None, :]                  # (B,1,K)
        return num / (cnt + 1e-6)

    def pcs(c):
        gram = jnp.einsum('bci,bcj->bij', c, c)
        n = jnp.sqrt(jnp.sum(c * c, axis=1))                        # (B,K)
        den = jnp.maximum(n[:, :, None] * n[:, None, :], 1e-8)
        return gram / den

    return loss_weight * jnp.mean((pcs(centers(f_s)) - pcs(centers(f_t))) ** 2)


if __name__ == "__main__":
    B, C, H, W = 2, 4, 16, 16
    K = 8
    loss_weight = 1.0

    key = jax.random.PRNGKey(0)
    k1, k2, k3 = jax.random.split(key, 3)
    preds_S = jax.random.normal(k1, (B, C, H, W), dtype=jnp.float32)
    preds_T = jax.random.normal(k2, (B, C, H, W), dtype=jnp.float32)
    target = jax.random.randint(k3, (B, 1, 8, 8), 0, K, dtype=jnp.int32)

    ref = jax.block_until_ready(
        _reference_loss(preds_S, preds_T, target, K, loss_weight))

    # f32 path, auto tile (single HW tile at this toy size).
    loss = jax.block_until_ready(
        inter_region_loss(preds_S, preds_T, target, K, loss_weight))
    assert jnp.allclose(loss, ref, rtol=5e-5, atol=1e-6), (loss, ref)

    # f32 path with forced HW tiling (exercises the reduction-accumulator path).
    loss_tiled = jax.block_until_ready(
        inter_region_loss(preds_S, preds_T, target, K, loss_weight, hw_tile=128))
    assert jnp.allclose(loss_tiled, ref, rtol=5e-5, atol=1e-6), (loss_tiled, ref)

    # bf16 feature path (half the HBM traffic); compare vs bf16-rounded reference.
    pS_bf = preds_S.astype(jnp.bfloat16)
    pT_bf = preds_T.astype(jnp.bfloat16)
    loss_bf = jax.block_until_ready(
        inter_region_loss(pS_bf, pT_bf, target, K, loss_weight, hw_tile=128))
    ref_bf = jax.block_until_ready(
        _reference_loss(pS_bf.astype(jnp.float32), pT_bf.astype(jnp.float32),
                        target, K, loss_weight))
    assert jnp.allclose(loss_bf, ref_bf, rtol=2e-2, atol=1e-3), (loss_bf, ref_bf)

    print("KERNEL_OK")
</pallas_src>

<mosaic_0001>
module attributes {stable_mosaic.version = 11 : i64} {
  func.func @_inter_region_kernel(%arg0: i32, %arg1: i32, %arg2: memref<1x1x256xi32, #tpu.memory_space<vmem>>, %arg3: memref<1x4x256xf32, #tpu.memory_space<vmem>>, %arg4: memref<1x4x256xf32, #tpu.memory_space<vmem>>, %arg5: memref<1x8x8xf32, #tpu.memory_space<vmem>>, %arg6: memref<1x8x8xf32, #tpu.memory_space<vmem>>, %arg7: memref<4x8xf32, #tpu.memory_space<vmem>>, %arg8: memref<4x8xf32, #tpu.memory_space<vmem>>, %arg9: memref<8x1xf32, #tpu.memory_space<vmem>>) attributes {dimension_semantics = [#tpu.dimension_semantics<parallel>, #tpu.dimension_semantics<arbitrary>], iteration_bounds = array<i64: 2, 1>, scalar_prefetch = 0 : i64, scratch_operands = 3 : i64, tpu.core_type = #tpu.core_type<tc>, window_params = [{transform_indices = @transform_0, window_bounds = array<i64: 1, 1, 256>}, {transform_indices = @transform_1, window_bounds = array<i64: 1, 4, 256>}, {transform_indices = @transform_2, window_bounds = array<i64: 1, 4, 256>}, {transform_indices = @transform_3, window_bounds = array<i64: 1, 8, 8>}, {transform_indices = @transform_4, window_bounds = array<i64: 1, 8, 8>}]} {
    %c0_i32 = arith.constant 0 : i32
    %0 = arith.cmpi eq, %arg1, %c0_i32 : i32
    %1 = arith.extui %0 : i1 to i32
    %c0_i32_0 = arith.constant 0 : i32
    %2 = arith.cmpi ne, %1, %c0_i32_0 : i32
    scf.if %2 {
      %cst_25 = arith.constant 0.000000e+00 : f32
      %32 = vector.broadcast %cst_25 : f32 to vector<4x8xf32>
      %c0_26 = arith.constant 0 : index
      %c0_27 = arith.constant 0 : index
      %33 = vector.load %arg7[%c0_26, %c0_27] : memref<4x8xf32, #tpu.memory_space<vmem>>, vector<4x8xf32>
      tpu.vector_store %arg7[%c0_26, %c0_27], %32 {strides = array<i32>} : memref<4x8xf32, #tpu.memory_space<vmem>>, vector<4x8xf32>,
      %cst_28 = arith.constant 0.000000e+00 : f32
      %34 = vector.broadcast %cst_28 : f32 to vector<4x8xf32>
      %c0_29 = arith.constant 0 : index
      %c0_30 = arith.constant 0 : index
      %35 = vector.load %arg8[%c0_29, %c0_30] : memref<4x8xf32, #tpu.memory_space<vmem>>, vector<4x8xf32>
      tpu.vector_store %arg8[%c0_29, %c0_30], %34 {strides = array<i32>} : memref<4x8xf32, #tpu.memory_space<vmem>>, vector<4x8xf32>,
      %cst_31 = arith.constant 0.000000e+00 : f32
      %36 = vector.broadcast %cst_31 : f32 to vector<8x1xf32>
      %c0_32 = arith.constant 0 : index
      %c0_33 = arith.constant 0 : index
      %37 = vector.load %arg9[%c0_32, %c0_33] : memref<8x1xf32, #tpu.memory_space<vmem>>, vector<8x1xf32>
      tpu.vector_store %arg9[%c0_32, %c0_33], %36 {strides = array<i32>} : memref<8x1xf32, #tpu.memory_space<vmem>>, vector<8x1xf32>,
    } else {
    }
    %c0 = arith.constant 0 : index
    %c0_1 = arith.constant 0 : index
    %c0_2 = arith.constant 0 : index
    %3 = vector.load %arg2[%c0, %c0_1, %c0_2] : memref<1x1x256xi32, #tpu.memory_space<vmem>>, vector<1x1x256xi32>
    %4 = vector.shape_cast %3 : vector<1x1x256xi32> to vector<1x256xi32>
    %5 = tpu.iota {dimensions = array<i32: 0>} : vector<8x256xi32>
    %6 = vector.broadcast %4 : vector<1x256xi32> to vector<8x256xi32>
    %7 = arith.cmpi eq, %6, %5 : vector<8x256xi32>
    %c0_3 = arith.constant 0 : index
    %c0_4 = arith.constant 0 : index
    %8 = vector.load %arg9[%c0_3, %c0_4] : memref<8x1xf32, #tpu.memory_space<vmem>>, vector<8x1xf32>
    %9 = arith.extui %7 : vector<8x256xi1> to vector<8x256xi32>
    %10 = arith.sitofp %9 : vector<8x256xi32> to vector<8x256xf32>
    %cst = arith.constant dense<0.000000e+00> : vector<8xf32>
    %11 = vector.multi_reduction <add>, %10, %cst [1] : vector<8x256xf32> to vector<8xf32>
    %12 = vector.shape_cast %11 : vector<8xf32> to vector<8x1xf32>
    %13 = arith.addf %8, %12 : vector<8x1xf32>
    %c0_5 = arith.constant 0 : index
    %c0_6 = arith.constant 0 : index
    %14 = vector.load %arg9[%c0_5, %c0_6] : memref<8x1xf32, #tpu.memory_space<vmem>>, vector<8x1xf32>
    tpu.vector_store %arg9[%c0_5, %c0_6], %13 {strides = array<i32>} : memref<8x1xf32, #tpu.memory_space<vmem>>, vector<8x1xf32>,
    %15 = arith.extui %7 : vector<8x256xi1> to vector<8x256xi32>
    %16 = arith.sitofp %15 : vector<8x256xi32> to vector<8x256xf32>
    %c0_7 = arith.constant 0 : index
    %c0_8 = arith.constant 0 : index
    %17 = vector.load %arg7[%c0_7, %c0_8] : memref<4x8xf32, #tpu.memory_space<vmem>>, vector<4x8xf32>
    %c0_9 = arith.constant 0 : index
    %c0_10 = arith.constant 0 : index
    %c0_11 = arith.constant 0 : index
    %18 = vector.load %arg3[%c0_9, %c0_10, %c0_11] : memref<1x4x256xf32, #tpu.memory_space<vmem>>, vector<1x4x256xf32>
    %19 = vector.shape_cast %18 : vector<1x4x256xf32> to vector<4x256xf32>
    %cst_12 = arith.constant dense<0.000000e+00> : vector<4x8xf32>
    %20 = tpu.matmul %19, %16, %cst_12 {dimension_numbers = #tpu.dot_dimension_numbers<[1], [1], [0], [0], [0, 0, 1, 0], [], []>} : vector<4x256xf32>, vector<8x256xf32>, vector<4x8xf32> -> vector<4x8xf32>
    %21 = arith.addf %17, %20 : vector<4x8xf32>
    %c0_13 = arith.constant 0 : index
    %c0_14 = arith.constant 0 : index
    %22 = vector.load %arg7[%c0_13, %c0_14] : memref<4x8xf32, #tpu.memory_space<vmem>>, vector<4x8xf32>
    tpu.vector_store %arg7[%c0_13, %c0_14], %21 {strides = array<i32>} : memref<4x8xf32, #tpu.memory_space<vmem>>, vector<4x8xf32>,
    %c0_15 = arith.constant 0 : index
    %c0_16 = arith.constant 0 : index
    %23 = vector.load %arg8[%c0_15, %c0_16] : memref<4x8xf32, #tpu.memory_space<vmem>>, vector<4x8xf32>
    %c0_17 = arith.constant 0 : index
    %c0_18 = arith.constant 0 : index
    %c0_19 = arith.constant 0 : index
    %24 = vector.load %arg4[%c0_17, %c0_18, %c0_19] : memref<1x4x256xf32, #tpu.memory_space<vmem>>, vector<1x4x256xf32>
    %25 = vector.shape_cast %24 : vector<1x4x256xf32> to vector<4x256xf32>
    %cst_20 = arith.constant dense<0.000000e+00> : vector<4x8xf32>
    %26 = tpu.matmul %25, %16, %cst_20 {dimension_numbers = #tpu.dot_dimension_numbers<[1], [1], [0], [0], [0, 0, 1, 0], [], []>} : vector<4x256xf32>, vector<8x256xf32>, vector<4x8xf32> -> vector<4x8xf32>
    %27 = arith.addf %23, %26 : vector<4x8xf32>
    %c0_21 = arith.constant 0 : index
    %c0_22 = arith.constant 0 : index
    %28 = vector.load %arg8[%c0_21, %c0_22] : memref<4x8xf32, #tpu.memory_space<vmem>>, vector<4x8xf32>
    tpu.vector_store %arg8[%c0_21, %c0_22], %27 {strides = array<i32>} : memref<4x8xf32, #tpu.memory_space<vmem>>, vector<4x8xf32>,
    %c0_i32_23 = arith.constant 0 : i32
    %29 = arith.cmpi eq, %arg1, %c0_i32_23 : i32
    %30 = arith.extui %29 : i1 to i32
    %c0_i32_24 = arith.constant 0 : i32
    %31 = arith.cmpi ne, %30, %c0_i32_24 : i32
    scf.if %31 {
      %c0_25 = arith.constant 0 : index
      %c0_26 = arith.constant 0 : index
      %32 = vector.load %arg9[%c0_25, %c0_26] : memref<8x1xf32, #tpu.memory_space<vmem>>, vector<8x1xf32>
      %cst_27 = arith.constant 9.99999997E-7 : f32
      %33 = vector.broadcast %cst_27 : f32 to vector<8x1xf32>
      %34 = arith.addf %32, %33 : vector<8x1xf32>
      %cst_28 = arith.constant 1.000000e+00 : f32
      %35 = vector.broadcast %cst_28 : f32 to vector<8x1xf32>
      %36 = arith.divf %35, %34 : vector<8x1xf32>
      %cst_29 = arith.constant dense<0.000000e+00> : vector<8x8xf32>
      %37 = tpu.matmul %36, %36, %cst_29 {dimension_numbers = #tpu.dot_dimension_numbers<[1], [1], [0], [0], [0, 0, 1, 0], [], []>} : vector<8x1xf32>, vector<8x1xf32>, vector<8x8xf32> -> vector<8x8xf32>
      %38 = tpu.iota {dimensions = array<i32: 0>} : vector<8x8xi32>
      %39 = tpu.iota {dimensions = array<i32: 1>} : vector<8x8xi32>
      %40 = arith.cmpi eq, %38, %39 : vector<8x8xi32>
      %41 = arith.extui %40 : vector<8x8xi1> to vector<8x8xi32>
      %42 = arith.sitofp %41 : vector<8x8xi32> to vector<8x8xf32>
      %c0_30 = arith.constant 0 : index
      %c0_31 = arith.constant 0 : index
      %43 = vector.load %arg7[%c0_30, %c0_31] : memref<4x8xf32, #tpu.memory_space<vmem>>, vector<4x8xf32>
      %cst_32 = arith.constant dense<0.000000e+00> : vector<8x8xf32>
      %44 = tpu.matmul %43, %43, %cst_32 {dimension_numbers = #tpu.dot_dimension_numbers<[0], [0], [1], [1], [0, 1, 1, 1], [], []>} : vector<4x8xf32>, vector<4x8xf32>, vector<8x8xf32> -> vector<8x8xf32>
      %45 = arith.mulf %44, %37 : vector<8x8xf32>
      %46 = arith.mulf %45, %42 : vector<8x8xf32>
      %cst_33 = arith.constant dense<0.000000e+00> : vector<8xf32>
      %47 = vector.multi_reduction <add>, %46, %cst_33 [1] : vector<8x8xf32> to vector<8xf32>
      %48 = vector.shape_cast %47 : vector<8xf32> to vector<8x1xf32>
      %cst_34 = arith.constant 0.000000e+00 : f32
      %49 = vector.broadcast %cst_34 : f32 to vector<8x1xf32>
      %50 = arith.maximumf %48, %49 : vector<8x1xf32>
      %51 = math.sqrt %50 : vector<8x1xf32>
      %cst_35 = arith.constant dense<0.000000e+00> : vector<8x8xf32>
      %52 = tpu.matmul %51, %51, %cst_35 {dimension_numbers = #tpu.dot_dimension_numbers<[1], [1], [0], [0], [0, 0, 1, 0], [], []>} : vector<8x1xf32>, vector<8x1xf32>, vector<8x8xf32> -> vector<8x8xf32>
      %cst_36 = arith.constant 9.99999993E-9 : f32
      %53 = vector.broadcast %cst_36 : f32 to vector<8x8xf32>
      %54 = arith.maximumf %52, %53 : vector<8x8xf32>
      %55 = arith.divf %45, %54 : vector<8x8xf32>
      %c0_37 = arith.constant 0 : index
      %c0_38 = arith.constant 0 : index
      %c0_39 = arith.constant 0 : index
      %56 = vector.load %arg5[%c0_37, %c0_38, %c0_39] : memref<1x8x8xf32, #tpu.memory_space<vmem>>, vector<1x8x8xf32>
      %57 = vector.shape_cast %56 : vector<1x8x8xf32> to vector<8x8xf32>
      %58 = vector.shape_cast %55 : vector<8x8xf32> to vector<1x8x8xf32>
      tpu.vector_store %arg5[%c0_37, %c0_38, %c0_39], %58 {strides = array<i32>} : memref<1x8x8xf32, #tpu.memory_space<vmem>>, vector<1x8x8xf32>,
      %c0_40 = arith.constant 0 : index
      %c0_41 = arith.constant 0 : index
      %59 = vector.load %arg8[%c0_40, %c0_41] : memref<4x8xf32, #tpu.memory_space<vmem>>, vector<4x8xf32>
      %cst_42 = arith.constant dense<0.000000e+00> : vector<8x8xf32>
      %60 = tpu.matmul %59, %59, %cst_42 {dimension_numbers = #tpu.dot_dimension_numbers<[0], [0], [1], [1], [0, 1, 1, 1], [], []>} : vector<4x8xf32>, vector<4x8xf32>, vector<8x8xf32> -> vector<8x8xf32>
      %61 = arith.mulf %60, %37 : vector<8x8xf32>
      %62 = arith.mulf %61, %42 : vector<8x8xf32>
      %cst_43 = arith.constant dense<0.000000e+00> : vector<8xf32>
      %63 = vector.multi_reduction <add>, %62, %cst_43 [1] : vector<8x8xf32> to vector<8xf32>
      %64 = vector.shape_cast %63 : vector<8xf32> to vector<8x1xf32>
      %cst_44 = arith.constant 0.000000e+00 : f32
      %65 = vector.broadcast %cst_44 : f32 to vector<8x1xf32>
      %66 = arith.maximumf %64, %65 : vector<8x1xf32>
      %67 = math.sqrt %66 : vector<8x1xf32>
      %cst_45 = arith.constant dense<0.000000e+00> : vector<8x8xf32>
      %68 = tpu.matmul %67, %67, %cst_45 {dimension_numbers = #tpu.dot_dimension_numbers<[1], [1], [0], [0], [0, 0, 1, 0], [], []>} : vector<8x1xf32>, vector<8x1xf32>, vector<8x8xf32> -> vector<8x8xf32>
      %cst_46 = arith.constant 9.99999993E-9 : f32
      %69 = vector.broadcast %cst_46 : f32 to vector<8x8xf32>
      %70 = arith.maximumf %68, %69 : vector<8x8xf32>
      %71 = arith.divf %61, %70 : vector<8x8xf32>
      %c0_47 = arith.constant 0 : index
      %c0_48 = arith.constant 0 : index
      %c0_49 = arith.constant 0 : index
      %72 = vector.load %arg6[%c0_47, %c0_48, %c0_49] : memref<1x8x8xf32, #tpu.memory_space<vmem>>, vector<1x8x8xf32>
      %73 = vector.shape_cast %72 : vector<1x8x8xf32> to vector<8x8xf32>
      %74 = vector.shape_cast %71 : vector<8x8xf32> to vector<1x8x8xf32>
      tpu.vector_store %arg6[%c0_47, %c0_48, %c0_49], %74 {strides = array<i32>} : memref<1x8x8xf32, #tpu.memory_space<vmem>>, vector<1x8x8xf32>,
    } else {
    }
    return
  }
  func.func @transform_0(%arg0: i32, %arg1: i32) -> (i32, i32, i32) {
    %c0_i32 = arith.constant 0 : i32
    %c0_i32_0 = arith.constant 0 : i32
    return %arg0, %c0_i32, %arg1 : i32, i32, i32
  }
  func.func @transform_1(%arg0: i32, %arg1: i32) -> (i32, i32, i32) {
    %c0_i32 = arith.constant 0 : i32
    %c0_i32_0 = arith.constant 0 : i32
    return %arg0, %c0_i32, %arg1 : i32, i32, i32
  }
  func.func @transform_2(%arg0: i32, %arg1: i32) -> (i32, i32, i32) {
    %c0_i32 = arith.constant 0 : i32
    %c0_i32_0 = arith.constant 0 : i32
    return %arg0, %c0_i32, %arg1 : i32, i32, i32
  }
  func.func @transform_3(%arg0: i32, %arg1: i32) -> (i32, i32, i32) {
    %c0_i32 = arith.constant 0 : i32
    %c0_i32_0 = arith.constant 0 : i32
    %c0_i32_1 = arith.constant 0 : i32
    return %arg0, %c0_i32, %c0_i32_0 : i32, i32, i32
  }
  func.func @transform_4(%arg0: i32, %arg1: i32) -> (i32, i32, i32) {
    %c0_i32 = arith.constant 0 : i32
    %c0_i32_0 = arith.constant 0 : i32
    %c0_i32_1 = arith.constant 0 : i32
    return %arg0, %c0_i32, %c0_i32_0 : i32, i32, i32
  }
}

</mosaic_0001>

<bundles_post_ra>
// kernel: tpu_custom_call.1
= control target key start
LH: loop header
LB: loop body
LE: loop exit
PB: predicated region body
PF: predicated region fallthrough
CT: control target
= control target key end

     0   :  { %s1961_s0 = inlined_call_operand.hbm [shape: s32[2,1,256], index: 0, kind: input, shape index: {}]   ;;  %s1962_s1 = inlined_call_operand.hbm [shape: f32[2,4,256], index: 1, kind: input, shape index: {}]   ;;  %s1963_s2 = inlined_call_operand.hbm [shape: f32[2,4,256], index: 2, kind: input, shape index: {}]   ;;  %s1964_s3 = inlined_call_operand.hbm [shape: f32[2,8,8], index: 3, kind: output, shape index: {0}]   ;;  %s1965_s4 = inlined_call_operand.hbm [shape: f32[2,8,8], index: 4, kind: output, shape index: {1}]  }
   0x1   :  { %1972 = sst [smem:[#allocation22_spill]] %s1962_s1 }
   0x2   :  { %10 = vsyncpa [#allocation6], 0 }
   0x3   :  { %12 = vsyncpa [#allocation6 + $0x1], 0 }
   0x4   :  { %13 = vsyncpa [#allocation9], 0 }
   0x5   :  { %15 = vsyncpa [#allocation9 + $0x1], 0 }
   0x6   :  { %16 = vsyncpa [#allocation7], 0 }
   0x7   :  { %18 = vsyncpa [#allocation7 + $0x1], 0 }
   0x8   :  { %19 = vsyncpa [#allocation13], 0 }
   0x9   :  { %21 = vsyncpa [#allocation13 + $0x1], 0  ;;  %s1608_s15 = smov 0   ;;  %s1610_s16 = smov 0  }
   0xa   :  { %s1612_s17 = smov 0   ;;  %s1614_s18 = smov 0  }
   0xb   :  { %s1616_s19 = smov 0   ;;  %s1618_s20 = smov 0  }
   0xc LB: > { %1973 = sst [smem:[#allocation18_spill]] %s1561_s17  ;;  %s1639_s21 = sadd.s32 4294967295, %s1573_s20   ;;  %s1573_s20 = sphi %s1618_s20, %s27_s20   ;;  %s1569_s19 = sphi %s1616_s19, %s1994_s19   ;;  %s1565_s18 = sphi %s1614_s18, %s1993_s18   ;;  %s1561_s17 = sphi %s1612_s17, %s1992_s17   ;;  %s1557_s16 = sphi %s1610_s16, %s1996_s16   ;;  %s1553_s15 = sphi %s1608_s15, %s1995_s15  }
   0xd   : > { %1974 = sst [smem:[#allocation19_spill]] %s1569_s19  ;;  %s1194_s22 = sadd.s32 4294967294, %s1573_s20  }
   0xe   : > { %s39_s23 = sadd.s32 1, %s1569_s19  ;;  %s48_s24 = sadd.s32 1, %s1561_s17 }
   0xf   : > { %p41_p0 = scmp.ge.s32.totalorder %s39_s23, 2  ;;  %p55_p1 = scmp.ne.s32.totalorder %s1561_s17, %s1557_s16 }
  0x10   : > { %p56_p2 = scmp.eq.s32.totalorder %s1573_s20, 0  ;;  %p61_p3 = scmp.ne.s32.totalorder %s1557_s16, %s1553_s15 }
  0x11   : > { %s1998_s23 = smov (%p41_p0, %s39_s23), 0  ;;  %p62_p5 = scmp.eq.s32.totalorder %s1639_s21, 0 }
  0x12   : > { %1975 = sst [smem:[#allocation20_spill]] %s1998_s23  ;;  %p1651_p4 = por %p56_p2, %p55_p1 }
  0x13   : > { %s43_s26 = ssub.s32 %s1569_s19, %s1998_s23  ;;  %p141_p6 = scmp.eq.s32.totalorder %s1639_s21, 1 }
  0x14   : > { %p46_p7 = scmp.eq.s32.totalorder %s43_s26, 0  ;;  %p1659_p8 = por %p62_p5, %p61_p3 }
  0x15   : > { %p1663_p9 = por %p141_p6, %p55_p1  ;;  %p147_p10 = scmp.eq.s32.totalorder %s1194_s22, 1 }
  0x16   : > { %s1977_s27 = scalar_select %p1659_p8, 1, 0 }
  0x17   : > { %s1978_s28 = scalar_select %p1663_p9, 1, 0 }
  0x18   : > { %s1668_s29 = scalar_select %p46_p7, %s1561_s17, %s48_s24  }
  0x19   : > { %p1670_p11 = por %p147_p10, %p61_p3  ;;  %p1300_p13 = scmp.lt.s32.totalorder %s1573_s20, 2 }
  0x1a   : > { %1979 = sst [smem:[#allocation21_spill]] %s1668_s29  ;;  %s1677_s5 = sand.u32 1, %s1561_s17  }
  0x1b   : > { %s1980_s30 = scalar_select %p1670_p11, 1, 0 }
  0x1c   : > { %s214_s6 = sand.u32 1, %s1573_s20   ;;  %s1967_s7 = sshll.u32 %s1677_s5, 3 }
  0x1d   : > { %p1683_p0 = pnand %p1300_p13, %p1651_p4  ;;  %s1236_s9 = sshll.u32 %s1569_s19, 7 }
  0x1e   : > { %s1982_s1 = sld [smem:[#allocation22_spill]]  ;;  %s218_s13 = scalar_lea.vmem [#allocation8], %s1967_s7 }
  0x1f   : > { %s228_s14 = sshll.u32 %s218_s13, 4  ;;  %s1700_s25 = scalar_lea.hbm %s1963_s2, %s1236_s9  ;;  %s1695_s14 = int_to_ptr.vmem [resolvable:$true] %s228_s14 }
  0x20   : > { %s1702_s26 = scalar_lea.sflag [#allocation9], %s214_s6  ;;  %p1708_p2 = pneg %p1683_p0 }
  0x24   : > { %s1691_s12 = scalar_lea.hbm %s1982_s1, %s1236_s9  ;;  %s1370_s7 = scalar_lea.hbm %s1982_s1, 256 }
  0x25   : > { %s1365_s23 = scalar_lea.hbm %s1691_s12, 128  ;;  %p1371_p5 = scmp.lt.u32.totalorder %s1691_s12, %s1982_s1 }
  0x26   : > { %p1366_p1 = scmp.ne.s32.totalorder %s1691_s12, %s1365_s23  ;;  %p1372_p6 = scmp.lt.u32.totalorder %s1370_s7, %s1365_s23 }
  0x27   : > { %p1374_p10 = scmp.lt.u32.totalorder %s1365_s23, %s1691_s12 }
  0x28   : > { %p1368_p3 = pnand %p1708_p2, %p1366_p1  ;;  %p1373_p7 = por %p1372_p6, %p1371_p5 }
  0x2a   : > { %p1369_p4 = pneg %p1368_p3  ;;  %p1375_p13 = por %p1374_p10, %p1373_p7 }
  0x2c   : > { %p1376_p12 = pnand %p1375_p13, %p1369_p4 }
  0x2e   : > { %1379 = shalt.err (!%p1376_p12)
}
  0x2f   : > { %s1380_s6 = scalar_lea.vmem %s1695_s14, 128  ;;  %s1575_s24 = smov [#allocation8]  }
  0x30   : > { %p1381_p1 = scmp.ne.s32.totalorder %s1695_s14, %s1380_s6  ;;  %s1385_s11 = sshll.u32 %s1575_s24, 4  ;;  %s1386_s11 = int_to_ptr.vmem [resolvable:$false] %s1385_s11 }
  0x31   : > { %s1387_s13 = scalar_lea.vmem %s1386_s11, 256  ;;  %p1388_p9 = scmp.lt.s32.totalorder %s1695_s14, %s1386_s11 }
  0x32   : > { %p1383_p3 = pnand %p1381_p1, %p1708_p2  ;;  %p1389_p8 = scmp.lt.s32.totalorder %s1387_s13, %s1380_s6 }
  0x34   : > { %p1384_p11 = pneg %p1383_p3  ;;  %p1390_p5 = por %p1389_p8, %p1388_p9 }
  0x36   : > { %p1391_p6 = pnand %p1390_p5, %p1384_p11 }
  0x38   : > { %1394 = shalt.err (!%p1391_p6)
}
  0x39   : > { %1289 = dma.hbm_to_vmem [thread:$0]  (!%p1683_p0), %s1691_s12, 128, %s1695_s14, %s1702_s26  }
  0x3a   : > { %p1206_p12 = scmp.ge.s32.totalorder %s1573_s20, 1  ;;  %p254_p4 = scmp.lt.s32.totalorder %s1573_s20, 3 }
  0x3b   : > { %s1197_s7 = sshll.u32 %s1677_s5, 1  ;;  %s1235_s22 = sshll.u32 %s1569_s19, 5 }
  0x3c   : > { %p1734_p7 = pnand %p1206_p12, %p254_p4  ;;  %s1743_s24 = scalar_lea.hbm %s1961_s0, %s1235_s22 }
  0x3d   : > { %s197_s11 = scalar_lea.vmem [#allocation5], %s1197_s7  ;;  %s1985_s14 = sshll.u32 %s1677_s5, 3 }
  0x3e   : > { %s1984_s23 = scalar_select %p1734_p7, 1, 0 }
  0x3f   : > { %s207_s12 = sshll.u32 %s197_s11, 4  ;;  %s239_s13 = scalar_lea.vmem [#allocation10], %s1985_s14  ;;  %s1747_s12 = int_to_ptr.vmem [resolvable:$true] %s207_s12 }
  0x40   : > { %s249_s1 = sshll.u32 %s239_s13, 4  ;;  %s194_s29 = scalar_lea.sflag [#allocation6], %s1677_s5  ;;  %s1749_s1 = int_to_ptr.vmem [resolvable:$true] %s249_s1 }
  0x41   : > { %s1395_s19 = scalar_lea.hbm %s1743_s24, 32  ;;  %s1400_s6 = scalar_lea.hbm %s1961_s0, 64 }
  0x42   : > { %p1396_p8 = scmp.ne.s32.totalorder %s1743_s24, %s1395_s19  ;;  %p1401_p10 = scmp.lt.u32.totalorder %s1743_s24, %s1961_s0 }
  0x43   : > { %p1402_p13 = scmp.lt.u32.totalorder %s1400_s6, %s1395_s19  ;;  %p1404_p3 = scmp.lt.u32.totalorder %s1395_s19, %s1743_s24 }
  0x44   : > { %p1398_p9 = pnand %p1396_p8, %p1708_p2 }
  0x45   : > { %p1403_p1 = por %p1402_p13, %p1401_p10 }
  0x46   : > { %p1399_p11 = pneg %p1398_p9 }
  0x47   : > { %p1405_p5 = por %p1404_p3, %p1403_p1 }
  0x49   : > { %p1406_p6 = pnand %p1405_p5, %p1399_p11 }
  0x4b   : > { %1409 = shalt.err (!%p1406_p6)
}
  0x4c   : > { %s1410_s5 = scalar_lea.vmem %s1747_s12, 32  ;;  %s1576_s11 = smov [#allocation5]  }
  0x4d   : > { %p1411_p12 = scmp.ne.s32.totalorder %s1747_s12, %s1410_s5  ;;  %s1415_s14 = sshll.u32 %s1576_s11, 4  ;;  %s1416_s14 = int_to_ptr.vmem [resolvable:$false] %s1415_s14 }
  0x4e   : > { %s1417_s17 = scalar_lea.vmem %s1416_s14, 64  ;;  %p1418_p9 = scmp.lt.s32.totalorder %s1747_s12, %s1416_s14 }
  0x4f   : > { %p1413_p4 = pnand %p1411_p12, %p1708_p2  ;;  %p1419_p7 = scmp.lt.s32.totalorder %s1417_s17, %s1410_s5 }
  0x51   : > { %p1414_p8 = pneg %p1413_p4  ;;  %p1420_p10 = por %p1419_p7, %p1418_p9 }
  0x53   : > { %p1421_p13 = pnand %p1420_p10, %p1414_p8 }
  0x55   : > { %1424 = shalt.err (!%p1421_p13)
}
  0x56   : > { %1286 = dma.hbm_to_vmem [thread:$0]  (!%p1683_p0), %s1743_s24, 32, %s1747_s12, %s194_s29  }
  0x57   : > { %s1425_s19 = scalar_lea.hbm %s1700_s25, 128  ;;  %s1430_s9 = scalar_lea.hbm %s1963_s2, 256 }
  0x58   : > { %p1426_p11 = scmp.ne.s32.totalorder %s1700_s25, %s1425_s19  ;;  %p1431_p7 = scmp.lt.u32.totalorder %s1700_s25, %s1963_s2 }
  0x59   : > { %p1432_p5 = scmp.lt.u32.totalorder %s1430_s9, %s1425_s19  ;;  %p1434_p12 = scmp.lt.u32.totalorder %s1425_s19, %s1700_s25 }
  0x5a   : > { %p1428_p1 = pnand %p1426_p11, %p1708_p2 }
  0x5b   : > { %p1433_p6 = por %p1432_p5, %p1431_p7 }
  0x5c   : > { %p1429_p3 = pneg %p1428_p1 }
  0x5d   : > { %p1435_p4 = por %p1434_p12, %p1433_p6 }
  0x5f   : > { %p1436_p8 = pnand %p1435_p4, %p1429_p3 }
  0x61   : > { %1439 = shalt.err (!%p1436_p8)
}
  0x62   : > { %s1440_s29 = scalar_lea.vmem %s1749_s1, 128  ;;  %s1577_s24 = smov [#allocation10]  }
  0x63   : > { %p1441_p9 = scmp.ne.s32.totalorder %s1749_s1, %s1440_s29  ;;  %s1445_s12 = sshll.u32 %s1577_s24, 4  ;;  %s1446_s12 = int_to_ptr.vmem [resolvable:$false] %s1445_s12 }
  0x64   : > { %s1447_s5 = scalar_lea.vmem %s1446_s12, 256  ;;  %p1448_p11 = scmp.lt.s32.totalorder %s1749_s1, %s1446_s12 }
  0x65   : > { %p1443_p10 = pnand %p1441_p9, %p1708_p2  ;;  %p1449_p1 = scmp.lt.s32.totalorder %s1447_s5, %s1440_s29 }
  0x67   : > { %p1444_p13 = pneg %p1443_p10  ;;  %p1450_p7 = por %p1449_p1, %p1448_p11 }
  0x69   : > { %p1451_p5 = pnand %p1450_p7, %p1444_p13 }
  0x6b   : > { %1454 = shalt.err (!%p1451_p5)
}
  0x6c   : > { %1292 = dma.hbm_to_vmem [thread:$0]  (!%p1683_p0), %s1700_s25, 128, %s1749_s1, %s1702_s26  }
  0x6d   : > { %p1986_p3 = scmp.ne.s32.totalorder %s1984_s23, 0 }
  0x6e   : > { %s1798_s10 = sand.u32 (!%p1986_p3), 1, %s1557_s16   ;;  %p1987_p2 = scmp.ne.s32.totalorder (!%p1986_p3), %s1977_s27, 0 }
  0x6f   : > { %258 = sbr.rel (%p1986_p3) target bundleno = 1130 (0x46a), region = 32  ;;  %s1207_s11 = sshll.u32 (!%p1986_p3), %s1798_s10, 1 }
  0x70   : > { %s261_s14 = scalar_lea.sflag (!%p1986_p3), [#allocation6], %s1798_s10  ;;  %s264_s17 = scalar_lea.vmem (!%p1986_p3), [#allocation5], %s1207_s11 }
  0x76   : > { %1536 = dma.done.wait (%p1987_p2), %s261_s14, 32  }
  0x77   : > { %1538 = vsyncadd (%p1987_p2), %s261_s14, 4294967264  ;;  %s269_s1 = sand.u32 1, %s1639_s21   ;;  %s1808_s8 = sshll.u32 %s1798_s10, 3 }
  0x78   : > { %s270_s25 = scalar_lea.sflag [#allocation9], %s269_s1  ;;  %s273_s26 = scalar_lea.vmem [#allocation8], %s1808_s8 }
  0x79   : > { %1540 = dma.done.wait (%p1987_p2), %s270_s25, 256  }
  0x7a   : > { %1542 = vsyncadd (%p1987_p2), %s270_s25, 4294967040  ;;  %v335_v0 = vlaneseq  ;;  %vm329_vm0 = vcmask 60416   ;;  %v1578_v1 = vmov 0.0   ;;  %v334_v5 = vld [vmem:[%s264_s17] sm:$0x3]  ;;  %v359_v6 = vld [vmem:[%s273_s26] sm:$0xff] }
  0x7b   : > { %330 = vst.msk [vmem:[#allocation2] sm:$0xf] %vm329_vm0, %v1578_v1  ;;  %331 = vst.msk [vmem:[#allocation3] sm:$0xf] %vm329_vm0, %v1578_v1  ;;  %s282_s21 = scalar_lea.vmem [#allocation10], %s1808_s8  ;;  %v361_v10 = vcombine.high %v359_v6, %v359_v6  ;;  %v1579_v12 = vmov 1.0  }
  0x7c   : > { %v1820_v2 = vshrl.u32 %v335_v0, 7  ;;  %v437_v7 = vld [vmem:[%s282_s21] sm:$0xff]  ;;  %vm332_vm3 = vcmask 7168   ;;  %vm1580_vm4 = vmmov 0   ;;  %vm635_vm5 = vcmask 1043456   ;;  %s1231_s27 = sshll.u32 %s1565_s18, 7 }
  0x7d   : > { %v439_v11 = vcombine.high %v437_v7, %v437_v7  ;;  %427 = vmatprep.mubr.f32.mxu0 %v361_v10  ;;  %333 = vst.msk [vmem:[#allocation4] sm:$0xff] %vm332_vm3, %v1578_v1  ;;  %vm631_vm6 = vcmask 31744   ;;  %v594_v36 = vand.u32 127, %v335_v0  ;;  %vm711_vm8 = vcmask 64512   ;;  %s314_s23 = scalar_lea.vmem [#allocation11], %s1808_s8  ;;  %s1870_s9 = scalar_lea.hbm %s1964_s3, %s1231_s27 }
  0x7e   : > { %v343_v3 = vsub.s32 1, %v1820_v2  ;;  %v339_v4 = vsub.s32 0, %v1820_v2  ;;  %s1018_s19 = sshll.u32 %s314_s23, 4  ;;  %s321_s6 = scalar_lea.vmem [#allocation12], %s1808_s8  ;;  %s1872_s19 = int_to_ptr.vmem [resolvable:$true] %s1018_s19 }
  0x7f   : > { %505 = vmatprep.mubr.f32.mxu1 %v439_v11  ;;  %vm595_vm7 = vcmp.eq.s32.totalorder %v1820_v2, %v594_v36  ;;  %s1877_s7 = sshll.u32 %s321_s6, 4  ;;  %s1000_s29 = scalar_lea.sflag [#allocation7], %s1798_s10  ;;  %s1911_s7 = int_to_ptr.vmem [resolvable:$true] %s1877_s7 }
  0x80   : > { %v344_v8 = vrot.slane %v334_v5, %v343_v3  ;;  %v340_v9 = vrot.slane %v334_v5, %v339_v4  ;;  %v1220_v38 = vsel %vm595_vm7, 1.0, %v1578_v1  ;;  %s1455_s24 = scalar_lea.vmem %s1872_s19, 128  ;;  %p1988_p6 = scmp.ne.s32.totalorder %s1978_s28, 0 }
  0x81   : > { %p1456_p0 = scmp.ne.s32.totalorder %s1872_s19, %s1455_s24  ;;  %s1581_s12 = smov [#allocation11]  }
  0x82   : > { %vm346_vm1 = vcmp.eq.s32.totalorder %v344_v8, %v1820_v2  ;;  %vm345_vm2 = vcmp.eq.s32.totalorder %v340_v9, %v1820_v2  ;;  %v358_v22 = vld [vmem:[#allocation2] sm:$0xf]  ;;  %v436_v23 = vld [vmem:[#allocation3] sm:$0xf]  ;;  %s1459_s5 = sshll.u32 %s1581_s12, 4  ;;  %s1460_s5 = int_to_ptr.vmem [resolvable:$false] %s1459_s5 }
  0x83   : > { %1214 = vmatprep.subr.msk.mxu0 %vm346_vm1, %v1579_v12  ;;  %1216 = vmatprep.subr.msk.mxu1 %vm346_vm1, %v1579_v12  ;;  %v1212_v13 = vsel %vm345_vm2, 1.0, %v1578_v1  ;;  %v1213_v14 = vsel %vm346_vm1, 1.0, %v1578_v1  ;;  %p1457_p12 = pnand %p1456_p0, %p1988_p6  ;;  %s1461_s11 = scalar_lea.vmem %s1460_s5, 256 }
  0x84   : > { %1215 = vmatpush1.xpose.msk.msra.mxu0 %vm345_vm2, %v1579_v12  ;;  %1217 = vmatpush1.xpose.msk.msra.mxu1 %vm345_vm2, %v1579_v12  ;;  %v352_v15 = vadd.f32 %v1213_v14, %v1212_v13  ;;  %v347_v16 = vld [vmem:[#allocation4] sm:$0xff]  ;;  %p1462_p8 = scmp.lt.s32.totalorder %s1872_s19, %s1460_s5  ;;  %p1463_p9 = scmp.lt.s32.totalorder %s1461_s11, %s1455_s24 }
  0x85   : > { %1253 = vmatprep.subr.mxu1 %v1578_v1  ;;  %1248 = vmatprep.subr.mxu0 %v1578_v1  ;;  %p1458_p4 = pneg %p1457_p12 }
  0x86   : > { %353 = vadd.xlane.f32.xlu0 %v352_v15  ;;  %p1464_p10 = por %p1463_p9, %p1462_p8 }
  0x87   : > { %428 = vmatmul.mubr.f32.vlgmr.msra.gmra.mrb[0].mxu0 %v359_v6  ;;  %506 = vmatmul.mubr.f32.vlgmr.msra.gmra.mrb[0].mxu1 %v437_v7 }
  0x88   : > { %1250 = vmatprep.mubr.msk.f32.mxu0 %vm1580_vm4, %v1578_v1  ;;  %1255 = vmatprep.mubr.msk.f32.mxu1 %vm1580_vm4, %v1578_v1  ;;  %p1465_p13 = pnand %p1464_p10, %p1458_p4 }
 0x113   : > { %v354_v17 = vpop.xlane.xlu0 %353 }
 0x114   : > { %v355_v18 = vadd.f32 %v354_v17, %v347_v16 }
 0x116   : > { %357 = vst.msk [vmem:[#allocation4] sm:$0xff] %vm332_vm3, %v355_v18 }
 0x11d   : > { %v516_v19 = vld [vmem:[#allocation4] sm:$0xff] }
 0x11e   : > { %v517_v20 = vadd.f32 1e-06, %v516_v19 }
 0x120   : > { %1355 = vrcp.f32 %v517_v20 }
 0x12a   : > { %v1356_v21 = vpop.eup %1355 }
 0x12b   : > { %1249 = vmatpush3.xpose.msk.msra.mxu0 %vm332_vm3, %v1356_v21 }
 0x12c   : > { %1258 = vmatprep.subr.mxu0 %v1578_v1 }
 0x12e   : > { %1251 = vmatmul.mubr.msk.f32.vlgmr.msra.gmra.mrb[2].mxu0 %vm332_vm3, %v1356_v21 }
 0x12f   : > { %1260 = vmatprep.mubr.msk.f32.mxu0 %vm1580_vm4, %v1578_v1 }
 0x15a   : > { %v429_v24 = vpop.f32.mrb[0].mxu0  ;;  %v507_v25 = vpop.f32.mrb[0].mxu1 }
 0x15b   : > { %v433_v26 = vadd.f32 %v429_v24, %v358_v22  ;;  %v431_v27 = vpop.f32.mrb[1].mxu0  ;;  %v511_v28 = vadd.f32 %v507_v25, %v436_v23  ;;  %v509_v29 = vpop.f32.mrb[1].mxu1 }
 0x15d   : > { %435 = vst.msk [vmem:[#allocation2] sm:$0xf] %vm329_vm0, %v433_v26  ;;  %512 = vst.msk [vmem:[#allocation3] sm:$0xf] %vm329_vm0, %v511_v28 }
 0x164   : > { %v598_v30 = vld [vmem:[#allocation2] sm:$0xf]  ;;  %v800_v31 = vld [vmem:[#allocation3] sm:$0xf] }
 0x165   : > { %599 = vxpose.xlu0.b32.start.end [1/1] (short) (narrow) %v598_v30, 8  ;;  %1254 = vmatpush3.msk.msra.mxu1 %vm635_vm5, %v598_v30 }
 0x166   : > { %801 = vxpose.xlu1.b32.start.end [1/1] (short) (narrow) %v800_v31, 8  ;;  %1263 = vmatprep.subr.mxu1 %v1578_v1 }
 0x1e5   : > { %v615_v32 = vpop.trf.xlu0 }
 0x1e6   : > { %1256 = vmatmul.mubr.msk.f32.vlgmr.msra.gmra.mrb[2].mxu1 %vm631_vm6, %v615_v32  ;;  %v817_v33 = vpop.trf.xlu1 }
 0x1e7   : > { %1264 = vmatpush3.msk.msra.mxu1 %vm635_vm5, %v800_v31  ;;  %1265 = vmatprep.mubr.msk.f32.mxu1 %vm1580_vm4, %v1578_v1 }
 0x1ea   : > { %1266 = vmatmul.mubr.msk.f32.vlgmr.msra.gmra.mrb[4].mxu1 %vm631_vm6, %v817_v33 }
 0x201   : > { %v589_v34 = vpop.f32.mrb[2].mxu0 }
 0x202   : > { %v1252_v35 = vpop.f32.mrb[3].mxu0 }
 0x2b9   : > { %v705_v37 = vpop.f32.mrb[2].mxu1 }
 0x2ba   : > { %v709_v39 = vmul.f32 %v705_v37, %v589_v34  ;;  %v1257_v40 = vpop.f32.mrb[3].mxu1 }
 0x2bc   : > { %v710_v41 = vmul.f32 %v1220_v38, %v709_v39 }
 0x2bd   : > { %v905_v42 = vpop.f32.mrb[4].mxu1 }
 0x2be   : > { %v1851_v43 = vmul.f32 %v905_v42, %v589_v34  ;;  %v1267_v44 = vpop.f32.mrb[5].mxu1  ;;  %v712_v45 = vsel %vm711_vm8, %v710_v41, 0.0 }
 0x2bf   : > { %713 = vadd.xlane.f32.xlu1 %v712_v45 }
 0x2c0   : > { %v910_v46 = vmul.f32 %v1220_v38, %v1851_v43 }
 0x2c2   : > { %v911_v47 = vsel %vm711_vm8, %v910_v46, 0.0 }
 0x2c3   : > { %912 = vadd.xlane.f32.xlu1 %v911_v47 }
 0x34c   : > { %v714_v48 = vpop.xlane.xlu1 %713 }
 0x34d   : > { %v715_v49 = vmax.f32 %v714_v48, 0.0 }
 0x34f   : > { %1357 = vrsqrt.f32 %v715_v49  ;;  %vm718_vm9 = vcmp.eq.f32.partialorder %v715_v49, inf  ;;  %v721_v54 = vand.u32 2147483648, %v715_v49  ;;  %vm720_vm10 = vcmp.eq.f32.partialorder %v715_v49, 0.0 }
 0x350   : > { %v913_v50 = vpop.xlane.xlu1 %912 }
 0x351   : > { %v914_v51 = vmax.f32 %v913_v50, 0.0 }
 0x353   : > { %1359 = vrsqrt.f32 %v914_v51  ;;  %vm917_vm11 = vcmp.eq.f32.partialorder %v914_v51, inf  ;;  %v920_v59 = vand.u32 2147483648, %v914_v51  ;;  %vm919_vm12 = vcmp.eq.f32.partialorder %v914_v51, 0.0 }
 0x359   : > { %v1358_v52 = vpop.eup %1357 }
 0x35a   : > { %v717_v53 = vmul.f32 %v1358_v52, %v715_v49 }
 0x35c   : > { %v719_v55 = vsel %vm718_vm9, %v715_v49, %v717_v53 }
 0x35d   : > { %v1360_v56 = vpop.eup %1359  ;;  %v722_v57 = vsel %vm720_vm10, %v721_v54, %v719_v55 }
 0x35e   : > { %1259 = vmatpush3.xpose.msk.msra.mxu0 %vm332_vm3, %v722_v57  ;;  %v916_v58 = vmul.f32 %v1360_v56, %v914_v51 }
 0x35f   : > { %1268 = vmatprep.subr.mxu0 %v1578_v1 }
 0x360   : > { %v918_v60 = vsel %vm917_vm11, %v914_v51, %v916_v58 }
 0x361   : > { %1261 = vmatmul.mubr.msk.f32.vlgmr.msra.gmra.mrb[4].mxu0 %vm332_vm3, %v722_v57  ;;  %v921_v61 = vsel %vm919_vm12, %v920_v59, %v918_v60 }
 0x362   : > { %1269 = vmatpush3.xpose.msk.msra.mxu0 %vm332_vm3, %v921_v61  ;;  %1270 = vmatprep.mubr.msk.f32.mxu0 %vm1580_vm4, %v1578_v1 }
 0x365   : > { %1271 = vmatmul.mubr.msk.f32.vlgmr.msra.gmra.mrb[6].mxu0 %vm332_vm3, %v921_v61 }
 0x434   : > { %v792_v62 = vpop.f32.mrb[4].mxu0 }
 0x435   : > { %v796_v63 = vmax.f32 %v792_v62, 1e-08  ;;  %v1262_v0 = vpop.f32.mrb[5].mxu0 }
 0x437   : > { %1361 = vrcp.f32 %v796_v63 }
 0x438   : > { %v991_v2 = vpop.f32.mrb[6].mxu0 }
 0x439   : > { %v995_v3 = vmax.f32 %v991_v2, 1e-08  ;;  %v1272_v4 = vpop.f32.mrb[7].mxu0 }
 0x43b   : > { %1363 = vrcp.f32 %v995_v3 }
 0x441   : > { %v1362_v5 = vpop.eup %1361 }
 0x442   : > { %v798_v6 = vmul.f32 %v1362_v5, %v709_v39 }
 0x444   : > { %799 = vst.msk [vmem:[%s314_s23] sm:$0xff] %vm711_vm8, %v798_v6 }
 0x445   : > { %v1364_v1 = vpop.eup %1363 }
 0x446   : > { %1468 = shalt.err (!%p1465_p13)
}
 0x447   : > { %s1469_s14 = scalar_lea.hbm %s1870_s9, 128  ;;  %s1473_s25 = scalar_lea.hbm %s1964_s3, 256 }
 0x448   : > { %p1470_p11 = scmp.ne.s32.totalorder %s1870_s9, %s1469_s14  ;;  %p1474_p5 = scmp.lt.u32.totalorder %s1870_s9, %s1964_s3 }
 0x449   : > { %p1475_p3 = scmp.lt.u32.totalorder %s1473_s25, %s1469_s14  ;;  %p1477_p0 = scmp.lt.u32.totalorder %s1469_s14, %s1870_s9 }
 0x44a   : > { %p1471_p1 = pnand %p1470_p11, %p1988_p6 }
 0x44b   : > { %p1476_p2 = por %p1475_p3, %p1474_p5 }
 0x44c   : > { %p1472_p7 = pneg %p1471_p1 }
 0x44d   : > { %p1478_p12 = por %p1477_p0, %p1476_p2 }
 0x44f   : > { %p1479_p4 = pnand %p1478_p12, %p1472_p7 }
 0x451   : > { %1482 = shalt.err (!%p1479_p4)
}
 0x452   : > { %1279 = dma.vmem_to_hbm [thread:$0]  (%p1988_p6), %s1872_s19, 128, %s1870_s9, %s1000_s29   ;;  %v997_v7 = vmul.f32 %v1364_v1, %v1851_v43 }
 0x453   : > { %s1908_s22 = scalar_lea.hbm %s1965_s4, %s1231_s27  ;;  %s1005_s24 = scalar_lea.sflag [#allocation13], %s1798_s10 }
 0x454   : > { %998 = vst.msk [vmem:[%s321_s6] sm:$0xff] %vm711_vm8, %v997_v7  ;;  %s1483_s12 = scalar_lea.vmem %s1911_s7, 128  ;;  %s1582_s18 = smov [#allocation12]  }
 0x455   : > { %p1484_p8 = scmp.ne.s32.totalorder %s1911_s7, %s1483_s12  ;;  %s1487_s19 = sshll.u32 %s1582_s18, 4  ;;  %s1488_s19 = int_to_ptr.vmem [resolvable:$false] %s1487_s19 }
 0x456   : > { %s1489_s9 = scalar_lea.vmem %s1488_s19, 256  ;;  %p1490_p13 = scmp.lt.s32.totalorder %s1911_s7, %s1488_s19 }
 0x457   : > { %p1485_p9 = pnand %p1484_p8, %p1988_p6  ;;  %p1491_p11 = scmp.lt.s32.totalorder %s1489_s9, %s1483_s12 }
 0x459   : > { %p1486_p10 = pneg %p1485_p9  ;;  %p1492_p1 = por %p1491_p11, %p1490_p13 }
 0x45b   : > { %p1493_p7 = pnand %p1492_p1, %p1486_p10 }
 0x45d   : > { %1496 = shalt.err (!%p1493_p7)
}
 0x45e   : > { %s1497_s10 = scalar_lea.hbm %s1908_s22, 128  ;;  %s1501_s6 = scalar_lea.hbm %s1965_s4, 256 }
 0x45f   : > { %p1498_p5 = scmp.ne.s32.totalorder %s1908_s22, %s1497_s10  ;;  %p1502_p0 = scmp.lt.u32.totalorder %s1908_s22, %s1965_s4 }
 0x460   : > { %p1503_p12 = scmp.lt.u32.totalorder %s1501_s6, %s1497_s10  ;;  %p1505_p8 = scmp.lt.u32.totalorder %s1497_s10, %s1908_s22 }
 0x461   : > { %p1499_p3 = pnand %p1498_p5, %p1988_p6 }
 0x462   : > { %p1504_p4 = por %p1503_p12, %p1502_p0 }
 0x463   : > { %p1500_p2 = pneg %p1499_p3 }
 0x464   : > { %p1506_p9 = por %p1505_p8, %p1504_p4 }
 0x466   : > { %p1507_p10 = pnand %p1506_p9, %p1500_p2 }
 0x468   : > { %1510 = shalt.err (!%p1507_p10)
}
 0x469   : > { %1280 = dma.vmem_to_hbm [thread:$0]  (%p1988_p6), %s1911_s7, 128, %s1908_s22, %s1005_s24  }
 0x46a PF: > { %s1043_s11 = sand.u32 1, %s1553_s15   ;;  %p1989_p13 = scmp.ne.s32.totalorder %s1980_s30, 0 }
 0x46b   : > { %p1990_p11 = scmp.ge.s32.totalorder %s1573_s20, 2  ;;  %s1044_s14 = scalar_lea.sflag [#allocation7], %s1043_s11 }
 0x46d   : > { %p1294_p1 = pnand %p1990_p11, %p1989_p13 }
 0x46f   : > { %1544 = dma.done.wait (!%p1294_p1), %s1044_s14, 128  }
 0x470   : > { %1546 = vsyncadd (!%p1294_p1), %s1044_s14, 4294967168  ;;  %s1053_s17 = scalar_lea.sflag [#allocation13], %s1043_s11 }
 0x471   : > { %1548 = dma.done.wait (!%p1294_p1), %s1053_s17, 128  }
 0x472   : > { %1550 = vsyncadd (!%p1294_p1), %s1053_s17, 4294967168  ;;  %s27_s20 = sadd.s32 1, %s1573_s20   ;;  %s1991_s28 = sld [smem:[#allocation18_spill]] }
 0x473   : > { %p24_p7 = scmp.ge.s32.totalorder %s27_s20, 4   ;;  %s1992_s17 = sld [smem:[#allocation21_spill]] }
 0x474   : > { %s1993_s18 = sld [smem:[#allocation19_spill]]  ;;  %s1994_s19 = sld [smem:[#allocation20_spill]] }
 0x475   : > { %s1995_s15 = smov %s1557_s16  ;;  %26 = sbr.rel (!%p24_p7) target bundleno = 12 (0xc), region = 126 }
 0x478   : > { %s1996_s16 = smov %s1991_s28 }
 0x47c   :  { %1058 = vsyncpa [#allocation6], 1 }
 0x47d   :  { %1060 = vsyncpa [#allocation6 + $0x1], 1 }
 0x47e   :  { %1061 = vsyncpa [#allocation9], 1 }
 0x47f   :  { %1063 = vsyncpa [#allocation9 + $0x1], 1 }
 0x480   :  { %1064 = vsyncpa [#allocation7], 1 }
 0x481   :  { %1066 = vsyncpa [#allocation7 + $0x1], 1 }
 0x482   :  { %1067 = vsyncpa [#allocation13], 1 }
 0x483   :  { %1069 = vsyncpa [#allocation13 + $0x1], 1 }

</bundles_post_ra>
